<compile_context>
chip_gen: v7x
topology: tpu7x:2x2x1
jax: 0.10.0
libtpu: 0.0.40
codegen_flags: <defaults>
</compile_context>

<pallas_src>
import functools

import jax
import jax.numpy as jnp
import numpy as np
from jax.experimental import pallas as pl
from jax.experimental.pallas import tpu as pltpu

LANE = 128


def _channel_attention_kernel(x_ref, w1t_ref, w2t_ref, o_ref,
                              sum_acc, max_acc, *,
                              hw_true, needs_mask):
    # x_ref block: (BT, C, T); w1t: (C, Ch); w2t: (Ch, C); o_ref: (BT, 1, C)
    # sum_acc / max_acc: (BT, C, LANE) f32 running per-lane accumulators.
    k = pl.program_id(1)

    @pl.when(k == 0)
    def _init():
        sum_acc[...] = jnp.zeros_like(sum_acc)
        max_acc[...] = jnp.full_like(max_acc, -jnp.inf)

    t = x_ref.shape[-1]
    n_chunks = t // LANE

    # Single read-modify-write of the scratch accumulators per grid step;
    # the chunk loop carries the partial sums/maxes in vregs.
    s = sum_acc[...]
    m = max_acc[...]
    for j in range(n_chunks):
        # Static 128-lane slice of the ref: cheap view, bounded vreg pressure.
        chunk = x_ref[:, :, j * LANE:(j + 1) * LANE].astype(jnp.float32)
        s = s + chunk                       # zero padding is harmless for sum
        if needs_mask and j == n_chunks - 1:
            # Padding (< 128 lanes) can only live in the last chunk of the
            # last HW tile; for earlier tiles this mask is all-true anyway.
            pos = (k * t + j * LANE
                   + jax.lax.broadcasted_iota(jnp.int32, (1, 1, LANE), 2))
            chunk = jnp.where(pos < hw_true, chunk, -jnp.inf)
        m = jnp.maximum(m, chunk)
    sum_acc[...] = s
    max_acc[...] = m

    @pl.when(k == pl.num_programs(1) - 1)
    def _finalize():
        bt = o_ref.shape[0]
        # Single small cross-lane reduce over 128 lanes (not the full HW).
        s_tot = jnp.sum(sum_acc[...], axis=-1)            # (BT, C)
        m_tot = jnp.max(max_acc[...], axis=-1)            # (BT, C)
        avg = s_tot * (1.0 / float(hw_true))              # true H*W divisor

        # Fused avg/max branches: one pair of matmuls with N = 2*BT.
        pooled = jnp.concatenate([avg, m_tot], axis=0)    # (2*BT, C)
        w1t = w1t_ref[...].astype(jnp.float32)            # (C, Ch)
        w2t = w2t_ref[...].astype(jnp.float32)            # (Ch, C)
        h = jnp.maximum(
            jnp.dot(pooled, w1t, preferred_element_type=jnp.float32), 0.0)
        out2 = jnp.dot(h, w2t, preferred_element_type=jnp.float32)  # (2BT, C)
        out = jax.nn.sigmoid(out2[:bt] + out2[bt:])       # (BT, C)
        o_ref[...] = out[:, None, :].astype(o_ref.dtype)  # lane-dense store


def _pick_block_b(B, cap=8):
    """Largest divisor of B (<= cap) that keeps >= 2 parallel grid steps."""
    if B <= 1:
        return 1
    best = 1
    for bt in range(1, min(cap, B) + 1):
        if B % bt == 0 and B // bt >= 2:
            best = bt
    return best


def channel_attention(x_nchw, w1, w2, *, block_b=None, hw_tile=None):
    """x_nchw: (B, C, H, W); w1: (C//ratio, C); w2: (C, C//ratio).

    Returns sigmoid(fc2(relu(fc1(avgpool(x)))) + fc2(relu(fc1(maxpool(x)))))
    with shape (B, C, 1, 1), matching the PyTorch module.
    """
    B, C, H, W = x_nchw.shape
    Ch = w1.shape[0]
    HW = H * W
    HWp = ((HW + LANE - 1) // LANE) * LANE

    x = x_nchw.reshape(B, C, HW)
    if HWp != HW:
        x = jnp.pad(x, ((0, 0), (0, 0), (0, HWp - HW)))   # zeros; max is masked

    BT = block_b if block_b is not None else _pick_block_b(B)
    assert B % BT == 0, "block_b must divide B"

    # HW tile: a multiple of 128 dividing HWp, capped so the x block stays
    # small enough for comfortable double-buffering on every generation
    # (including v7x's 64 MiB VMEM).
    if hw_tile is None:
        bytes_per_lane = BT * C * x.dtype.itemsize
        budget = 4 * 1024 * 1024
        hw_tile = max(LANE, (budget // max(1, bytes_per_lane)) // LANE * LANE)
    T = max(LANE, (min(int(hw_tile), HWp) // LANE) * LANE)
    while HWp % T != 0:
        T -= LANE

    grid = (B // BT, HWp // T)

    # Pre-transpose weights so the fused matmul needs no in-kernel transpose;
    # constant index_map -> DMA'd to VMEM once and kept resident.
    w1t = jnp.transpose(jnp.asarray(w1))   # (C, Ch)
    w2t = jnp.transpose(jnp.asarray(w2))   # (Ch, C)

    kernel = functools.partial(_channel_attention_kernel,
                               hw_true=HW,
                               needs_mask=(HWp != HW))

    out = pl.pallas_call(
        kernel,
        out_shape=jax.ShapeDtypeStruct((B, 1, C), x.dtype),
        grid_spec=pltpu.PrefetchScalarGridSpec(
            num_scalar_prefetch=0,
            grid=grid,
            in_specs=[
                pl.BlockSpec((BT, C, T), lambda b, k: (b, 0, k)),
                pl.BlockSpec((C, Ch), lambda b, k: (0, 0)),
                pl.BlockSpec((Ch, C), lambda b, k: (0, 0)),
            ],
            out_specs=pl.BlockSpec((BT, 1, C), lambda b, k: (b, 0, 0)),
            scratch_shapes=[
                pltpu.VMEM((BT, C, LANE), jnp.float32),   # running sum
                pltpu.VMEM((BT, C, LANE), jnp.float32),   # running max
            ],
        ),
        compiler_params=pltpu.CompilerParams(
            dimension_semantics=("parallel", "arbitrary")),
    )(x, w1t, w2t)

    return out.reshape(B, C, 1, 1)


def _reference(x, w1, w2):
    # Pure-JAX reference of the PyTorch forward.
    avg = jnp.mean(x, axis=(2, 3))                      # (B, C)
    mx = jnp.max(x, axis=(2, 3))                        # (B, C)

    def branch(p):
        h = jnp.maximum(p @ w1.T, 0.0)                  # (B, Ch)
        return h @ w2.T                                 # (B, C)

    out = jax.nn.sigmoid(branch(avg) + branch(mx))
    return out[:, :, None, None]


if __name__ == "__main__":
    # Shapes consistent with the module: in_planes=64, ratio=16 -> hidden=4.
    B, C = 2, 64
    ratio = 16
    Ch = C // ratio

    key = jax.random.PRNGKey(0)
    kx, k1, k2, kx2 = jax.random.split(key, 4)

    # Deterministic "kaiming-ish" init for the 1x1 conv weights (no bias).
    w1 = jax.random.normal(k1, (Ch, C), dtype=jnp.float32) * (1.0 / np.sqrt(C))
    w2 = jax.random.normal(k2, (C, Ch), dtype=jnp.float32) * (1.0 / np.sqrt(Ch))

    # Case 1: HW divisible by 128 (no masking); hw_tile=128 exercises the
    # multi-step HW reduction (grid = (2, 2)).
    x = jax.random.normal(kx, (B, C, 16, 16), dtype=jnp.float32)
    y = jax.block_until_ready(channel_attention(x, w1, w2, hw_tile=128))
    y_ref = jax.block_until_ready(_reference(x, w1, w2))
    assert y.shape == (B, C, 1, 1)
    np.testing.assert_allclose(np.asarray(y), np.asarray(y_ref),
                               rtol=1e-5, atol=1e-5)

    # Case 2: ragged HW (15*15 = 225 -> padded to 256) exercises the
    # masked-max path for the last lane chunk.
    x2 = jax.random.normal(kx2, (B, C, 15, 15), dtype=jnp.float32)
    y2 = jax.block_until_ready(channel_attention(x2, w1, w2))
    y2_ref = jax.block_until_ready(_reference(x2, w1, w2))
    np.testing.assert_allclose(np.asarray(y2), np.asarray(y2_ref),
                               rtol=1e-5, atol=1e-5)

    print("KERNEL_OK")
</pallas_src>

<mosaic_0001>
module attributes {stable_mosaic.version = 11 : i64} {
  func.func @_channel_attention_kernel(%arg0: i32, %arg1: i32, %arg2: memref<1x64x128xf32, #tpu.memory_space<vmem>>, %arg3: memref<64x4xf32, #tpu.memory_space<vmem>>, %arg4: memref<4x64xf32, #tpu.memory_space<vmem>>, %arg5: memref<1x1x64xf32, #tpu.memory_space<vmem>>, %arg6: memref<1x64x128xf32, #tpu.memory_space<vmem>>, %arg7: memref<1x64x128xf32, #tpu.memory_space<vmem>>) attributes {dimension_semantics = [#tpu.dimension_semantics<parallel>, #tpu.dimension_semantics<arbitrary>], iteration_bounds = array<i64: 2, 2>, scalar_prefetch = 0 : i64, scratch_operands = 2 : i64, tpu.core_type = #tpu.core_type<tc>, window_params = [{transform_indices = @transform_0, window_bounds = array<i64: 1, 64, 128>}, {pipeline_mode = #tpu.pipeline_mode<synchronous>, transform_indices = @transform_1, window_bounds = array<i64: 64, 4>}, {pipeline_mode = #tpu.pipeline_mode<synchronous>, transform_indices = @transform_2, window_bounds = array<i64: 4, 64>}, {transform_indices = @transform_3, window_bounds = array<i64: 1, 1, 64>}]} {
    %c0_i32 = arith.constant 0 : i32
    %0 = arith.cmpi eq, %arg1, %c0_i32 : i32
    %1 = arith.extui %0 : i1 to i32
    %c0_i32_0 = arith.constant 0 : i32
    %2 = arith.cmpi ne, %1, %c0_i32_0 : i32
    scf.if %2 {
      %cst = arith.constant 0.000000e+00 : f32
      %13 = vector.broadcast %cst : f32 to vector<1x64x128xf32>
      %c0_16 = arith.constant 0 : index
      %c0_17 = arith.constant 0 : index
      %c0_18 = arith.constant 0 : index
      %14 = vector.load %arg6[%c0_16, %c0_17, %c0_18] : memref<1x64x128xf32, #tpu.memory_space<vmem>>, vector<1x64x128xf32>
      tpu.vector_store %arg6[%c0_16, %c0_17, %c0_18], %13 {strides = array<i32>} : memref<1x64x128xf32, #tpu.memory_space<vmem>>, vector<1x64x128xf32>,
      %cst_19 = arith.constant 0xFF800000 : f32
      %15 = vector.broadcast %cst_19 : f32 to vector<1x64x128xf32>
      %c0_20 = arith.constant 0 : index
      %c0_21 = arith.constant 0 : index
      %c0_22 = arith.constant 0 : index
      %16 = vector.load %arg7[%c0_20, %c0_21, %c0_22] : memref<1x64x128xf32, #tpu.memory_space<vmem>>, vector<1x64x128xf32>
      tpu.vector_store %arg7[%c0_20, %c0_21, %c0_22], %15 {strides = array<i32>} : memref<1x64x128xf32, #tpu.memory_space<vmem>>, vector<1x64x128xf32>,
    } else {
    }
    %c0 = arith.constant 0 : index
    %c0_1 = arith.constant 0 : index
    %c0_2 = arith.constant 0 : index
    %3 = vector.load %arg6[%c0, %c0_1, %c0_2] : memref<1x64x128xf32, #tpu.memory_space<vmem>>, vector<1x64x128xf32>
    %c0_3 = arith.constant 0 : index
    %c0_4 = arith.constant 0 : index
    %c0_5 = arith.constant 0 : index
    %4 = vector.load %arg7[%c0_3, %c0_4, %c0_5] : memref<1x64x128xf32, #tpu.memory_space<vmem>>, vector<1x64x128xf32>
    %c0_6 = arith.constant 0 : index
    %c0_7 = arith.constant 0 : index
    %c0_8 = arith.constant 0 : index
    %5 = vector.load %arg2[%c0_6, %c0_7, %c0_8] : memref<1x64x128xf32, #tpu.memory_space<vmem>>, vector<1x64x128xf32>
    %6 = arith.addf %3, %5 : vector<1x64x128xf32>
    %7 = arith.maximumf %4, %5 : vector<1x64x128xf32>
    %c0_9 = arith.constant 0 : index
    %c0_10 = arith.constant 0 : index
    %c0_11 = arith.constant 0 : index
    %8 = vector.load %arg6[%c0_9, %c0_10, %c0_11] : memref<1x64x128xf32, #tpu.memory_space<vmem>>, vector<1x64x128xf32>
    tpu.vector_store %arg6[%c0_9, %c0_10, %c0_11], %6 {strides = array<i32>} : memref<1x64x128xf32, #tpu.memory_space<vmem>>, vector<1x64x128xf32>,
    %c0_12 = arith.constant 0 : index
    %c0_13 = arith.constant 0 : index
    %c0_14 = arith.constant 0 : index
    %9 = vector.load %arg7[%c0_12, %c0_13, %c0_14] : memref<1x64x128xf32, #tpu.memory_space<vmem>>, vector<1x64x128xf32>
    tpu.vector_store %arg7[%c0_12, %c0_13, %c0_14], %7 {strides = array<i32>} : memref<1x64x128xf32, #tpu.memory_space<vmem>>, vector<1x64x128xf32>,
    %c1_i32 = arith.constant 1 : i32
    %10 = arith.cmpi eq, %arg1, %c1_i32 : i32
    %11 = arith.extui %10 : i1 to i32
    %c0_i32_15 = arith.constant 0 : i32
    %12 = arith.cmpi ne, %11, %c0_i32_15 : i32
    scf.if %12 {
      %c0_16 = arith.constant 0 : index
      %c0_17 = arith.constant 0 : index
      %c0_18 = arith.constant 0 : index
      %13 = vector.load %arg6[%c0_16, %c0_17, %c0_18] : memref<1x64x128xf32, #tpu.memory_space<vmem>>, vector<1x64x128xf32>
      %cst = arith.constant dense<0.000000e+00> : vector<1x64xf32>
      %14 = vector.multi_reduction <add>, %13, %cst [2] : vector<1x64x128xf32> to vector<1x64xf32>
      %c0_19 = arith.constant 0 : index
      %c0_20 = arith.constant 0 : index
      %c0_21 = arith.constant 0 : index
      %15 = vector.load %arg7[%c0_19, %c0_20, %c0_21] : memref<1x64x128xf32, #tpu.memory_space<vmem>>, vector<1x64x128xf32>
      %cst_22 = arith.constant dense<0xFF800000> : vector<1x64xf32>
      %16 = vector.multi_reduction <maximumf>, %15, %cst_22 [2] : vector<1x64x128xf32> to vector<1x64xf32>
      %cst_23 = arith.constant 3.906250e-03 : f32
      %17 = vector.broadcast %cst_23 : f32 to vector<1x64xf32>
      %18 = arith.mulf %14, %17 : vector<1x64xf32>
      %19 = tpu.concatenate %18, %16 in 0 : vector<1x64xf32>, vector<1x64xf32> -> vector<2x64xf32>
      %c0_24 = arith.constant 0 : index
      %c0_25 = arith.constant 0 : index
      %20 = vector.load %arg3[%c0_24, %c0_25] : memref<64x4xf32, #tpu.memory_space<vmem>>, vector<64x4xf32>
      %c0_26 = arith.constant 0 : index
      %c0_27 = arith.constant 0 : index
      %21 = vector.load %arg4[%c0_26, %c0_27] : memref<4x64xf32, #tpu.memory_space<vmem>>, vector<4x64xf32>
      %cst_28 = arith.constant dense<0.000000e+00> : vector<2x4xf32>
      %22 = tpu.matmul %19, %20, %cst_28 {dimension_numbers = #tpu.dot_dimension_numbers<[1], [0], [0], [1], [0, 0, 1, 1], [], []>} : vector<2x64xf32>, vector<64x4xf32>, vector<2x4xf32> -> vector<2x4xf32>
      %cst_29 = arith.constant 0.000000e+00 : f32
      %23 = vector.broadcast %cst_29 : f32 to vector<2x4xf32>
      %24 = arith.maximumf %22, %23 : vector<2x4xf32>
      %cst_30 = arith.constant dense<0.000000e+00> : vector<2x64xf32>
      %25 = tpu.matmul %24, %21, %cst_30 {dimension_numbers = #tpu.dot_dimension_numbers<[1], [0], [0], [1], [0, 0, 1, 1], [], []>} : vector<2x4xf32>, vector<4x64xf32>, vector<2x64xf32> -> vector<2x64xf32>
      %26 = vector.extract_strided_slice %25 {offsets = [0, 0], sizes = [1, 64], strides = [1, 1]} : vector<2x64xf32> to vector<1x64xf32>
      %27 = vector.extract_strided_slice %25 {offsets = [1, 0], sizes = [1, 64], strides = [1, 1]} : vector<2x64xf32> to vector<1x64xf32>
      %28 = arith.addf %26, %27 : vector<1x64xf32>
      %29 = arith.negf %28 : vector<1x64xf32>
      %30 = math.exp %29 : vector<1x64xf32>
      %cst_31 = arith.constant 1.000000e+00 : f32
      %31 = vector.broadcast %cst_31 : f32 to vector<1x64xf32>
      %32 = arith.addf %31, %30 : vector<1x64xf32>
      %33 = arith.divf %31, %32 : vector<1x64xf32>
      %34 = vector.shape_cast %33 : vector<1x64xf32> to vector<1x1x64xf32>
      %c0_32 = arith.constant 0 : index
      %c0_33 = arith.constant 0 : index
      %c0_34 = arith.constant 0 : index
      %35 = vector.load %arg5[%c0_32, %c0_33, %c0_34] : memref<1x1x64xf32, #tpu.memory_space<vmem>>, vector<1x1x64xf32>
      tpu.vector_store %arg5[%c0_32, %c0_33, %c0_34], %34 {strides = array<i32>} : memref<1x1x64xf32, #tpu.memory_space<vmem>>, vector<1x1x64xf32>,
    } else {
    }
    return
  }
  func.func @transform_0(%arg0: i32, %arg1: i32) -> (i32, i32, i32) {
    %c0_i32 = arith.constant 0 : i32
    %c0_i32_0 = arith.constant 0 : i32
    return %arg0, %c0_i32, %arg1 : i32, i32, i32
  }
  func.func @transform_1(%arg0: i32, %arg1: i32) -> (i32, i32) {
    %c0_i32 = arith.constant 0 : i32
    %c0_i32_0 = arith.constant 0 : i32
    %c0_i32_1 = arith.constant 0 : i32
    return %c0_i32, %c0_i32_0 : i32, i32
  }
  func.func @transform_2(%arg0: i32, %arg1: i32) -> (i32, i32) {
    %c0_i32 = arith.constant 0 : i32
    %c0_i32_0 = arith.constant 0 : i32
    %c0_i32_1 = arith.constant 0 : i32
    return %c0_i32, %c0_i32_0 : i32, i32
  }
  func.func @transform_3(%arg0: i32, %arg1: i32) -> (i32, i32, i32) {
    %c0_i32 = arith.constant 0 : i32
    %c0_i32_0 = arith.constant 0 : i32
    %c0_i32_1 = arith.constant 0 : i32
    return %arg0, %c0_i32, %c0_i32_0 : i32, i32, i32
  }
}

</mosaic_0001>

<bundles_post_ra>
// kernel: tpu_custom_call.1
= control target key start
LH: loop header
LB: loop body
LE: loop exit
PB: predicated region body
PF: predicated region fallthrough
CT: control target
= control target key end

     0   :  { %8 = vsyncpa [#allocation5], 0  ;;  %s1348_s0 = inlined_call_operand.hbm [shape: f32[2,64,256], index: 0, kind: input, shape index: {}]   ;;  %s1349_s1 = inlined_call_operand.vmem [shape: f32[64,4], index: 1, kind: input, shape index: {}]   ;;  %s1350_s2 = inlined_call_operand.vmem [shape: f32[4,64], index: 2, kind: input, shape index: {}]   ;;  %s1351_s3 = inlined_call_operand.hbm [shape: f32[2,1,64], index: 3, kind: output, shape index: {}]  }
   0x1   :  { %10 = vsyncpa [#allocation5 + $0x1], 0 }
   0x2   :  { %11 = vsyncpa [#allocation6], 0 }
   0x3   :  { %13 = vsyncpa [#allocation6 + $0x1], 0  ;;  %s1082_s12 = smov 0   ;;  %s1084_s13 = smov 0  }
   0x4   :  { %s1086_s14 = smov 0   ;;  %s1088_s15 = smov 0  }
   0x5   :  { %s1090_s16 = smov 0   ;;  %s1092_s17 = smov 0  }
   0x6   :  { %s1094_s18 = smov 0   ;;  %s1096_s19 = smov 0  }
   0x7   :  { %s1098_s20 = smov 0   ;;  %s1100_s21 = smov 0  }
   0x8   :  { %s1102_s22 = smov 0  }
   0x9 LB: > { %s719_s23 = sadd.s32 4294967295, %s1050_s22   ;;  %s720_s24 = sadd.s32 4294967294, %s1050_s22   ;;  %s1050_s22 = sphi %s1102_s22, %s19_s22   ;;  %s1046_s21 = sphi %s1100_s21, %s1375_s21   ;;  %s1042_s20 = sphi %s1098_s20, %s1374_s20   ;;  %s1038_s19 = sphi %s1096_s19, %s1373_s19   ;;  %s1034_s18 = sphi %s1094_s18, %s1372_s18   ;;  %s1030_s17 = sphi %s1092_s17, %s1371_s17   ;;  %s1026_s16 = sphi %s1090_s16, %s1370_s16   ;;  %s1022_s15 = sphi %s1088_s15, %s1369_s15   ;;  %s1018_s14 = sphi %s1086_s14, %s1368_s14   ;;  %s1014_s13 = sphi %s1084_s13, %s1367_s13   ;;  %s1010_s12 = sphi %s1082_s12, %s1366_s12  }
   0xa   : > { %s28_s25 = sadd.s32 1, %s1042_s20  ;;  %s31_s26 = sadd.s32 1, %s1046_s21 }
   0xb   : > { %p29_p0 = scmp.ge.s32.totalorder %s28_s25, 2  ;;  %s40_s27 = sadd.s32 1, %s1030_s17 }
   0xc   : > { %p47_p1 = scmp.ne.s32.totalorder %s1030_s17, %s1026_s16  ;;  %p48_p2 = scmp.eq.s32.totalorder %s1050_s22, 0 }
   0xd   : > { %s1377_s25 = smov (%p29_p0, %s28_s25), 0  ;;  %s1379_s26 = smov (!%p29_p0, %s31_s26), %s1046_s21 }
   0xe   : > { %1355 = sst [smem:[#allocation10_spill]] %s1377_s25  ;;  %s36_s28 = ssub.s32 %s1042_s20, %s1377_s25 }
   0xf   : > { %p1148_p3 = por %p48_p2, %p47_p1  ;;  %p33_p4 = scmp.ge.s32.totalorder %s1379_s26, 2 }
  0x10   : > { %p53_p5 = scmp.ne.s32.totalorder %s1026_s16, %s1022_s15  ;;  %p54_p6 = scmp.eq.s32.totalorder %s719_s23, 0 }
  0x11   : > { %s108_s30 = sadd.s32 1, %s1018_s14  ;;  %s1381_s26 = smov (%p33_p4, %s1379_s26), 0 }
  0x12   : > { %1357 = sst [smem:[#allocation11_spill]] %s1381_s26  ;;  %p1156_p7 = por %p54_p6, %p53_p5 }
  0x13   : > { %p118_p8 = scmp.ne.s32.totalorder %s1018_s14, %s1014_s13  ;;  %s35_s5 = ssub.s32 %s1046_s21, %s1381_s26 }
  0x14   : > { %p119_p9 = scmp.eq.s32.totalorder %s719_s23, 3  ;;  %s37_s6 = sor.u32 %s36_s28, %s35_s5 }
  0x15   : > { %p106_p10 = scmp.eq.s32.totalorder %s35_s5, 0  ;;  %p38_p11 = scmp.eq.s32.totalorder %s37_s6, 0 }
  0x16   : > { %p1164_p12 = por %p119_p9, %p118_p8  ;;  %p124_p13 = scmp.ne.s32.totalorder %s1014_s13, %s1010_s12 }
  0x17   : > { %s1169_s8 = scalar_select %p106_p10, %s1018_s14, %s108_s30  }
  0x18   : > { %s1359_s7 = scalar_select %p1164_p12, 1, 0 }
  0x19   : > { %s1172_s9 = scalar_select %p38_p11, %s1030_s17, %s40_s27  }
  0x1a   : > { %p125_p0 = scmp.eq.s32.totalorder %s720_s24, 3  ;;  %p796_p1 = scmp.lt.s32.totalorder %s1050_s22, 4 }
  0x1b   : > { %s151_s11 = sand.u32 1, %s1030_s17   ;;  %s724_s23 = sshll.u32 %s1046_s21, 4 }
  0x1c   : > { %p1177_p2 = por %p125_p0, %p124_p13  ;;  %s723_s15 = sshll.u32 %s151_s11, 6 }
  0x1d   : > { %s160_s28 = sadd.s32 %s1042_s20, %s724_s23  ;;  %s155_s5 = scalar_lea.vmem [#allocation4], %s723_s15 }
  0x1e   : > { %s1360_s10 = scalar_select %p1177_p2, 1, 0 }
  0x1f   : > { %s163_s6 = sshll.u32 %s155_s5, 4  ;;  %s725_s26 = sshll.u32 %s160_s28, 7  ;;  %s1184_s6 = int_to_ptr.vmem [resolvable:$true] %s163_s6 }
  0x20   : > { %s1189_s27 = scalar_lea.hbm %s1348_s0, %s725_s26  ;;  %p1193_p4 = pnand %p796_p1, %p1148_p3 }
  0x21   : > { %s1197_s15 = scalar_lea.sflag [#allocation5], %s151_s11  ;;  %s898_s23 = scalar_lea.hbm %s1189_s27, 1024 }
  0x22   : > { %p899_p5 = scmp.ne.s32.totalorder %s1189_s27, %s898_s23  ;;  %p900_p6 = pneg %p1193_p4 }
  0x23   : > { %s903_s29 = scalar_lea.hbm %s1348_s0, 4096  ;;  %p904_p3 = scmp.lt.u32.totalorder %s1189_s27, %s1348_s0 }
  0x24   : > { %p901_p8 = pnand %p900_p6, %p899_p5  ;;  %p905_p10 = scmp.lt.u32.totalorder %s903_s29, %s898_s23 }
  0x25   : > { %p907_p13 = scmp.lt.u32.totalorder %s898_s23, %s1189_s27 }
  0x26   : > { %p902_p9 = pneg %p901_p8  ;;  %p906_p11 = por %p905_p10, %p904_p3 }
  0x28   : > { %p908_p0 = por %p907_p13, %p906_p11 }
  0x2a   : > { %p909_p1 = pnand %p908_p0, %p902_p9 }
  0x2c   : > { %912 = shalt.err (!%p909_p1)
}
  0x2d   : > { %s913_s11 = scalar_lea.vmem %s1184_s6, 1024  ;;  %s1052_s30 = smov [#allocation4]  }
  0x2e   : > { %p914_p5 = scmp.ne.s32.totalorder %s1184_s6, %s913_s11  ;;  %s918_s25 = sshll.u32 %s1052_s30, 4  ;;  %s919_s25 = int_to_ptr.vmem [resolvable:$false] %s918_s25 }
  0x2f   : > { %s920_s26 = scalar_lea.vmem %s919_s25, 2048  ;;  %p921_p12 = scmp.lt.s32.totalorder %s1184_s6, %s919_s25 }
  0x30   : > { %p916_p8 = pnand %p914_p5, %p900_p6  ;;  %p922_p3 = scmp.lt.s32.totalorder %s920_s26, %s913_s11 }
  0x32   : > { %p917_p2 = pneg %p916_p8  ;;  %p923_p10 = por %p922_p3, %p921_p12 }
  0x34   : > { %p924_p11 = pnand %p923_p10, %p917_p2 }
  0x36   : > { %927 = shalt.err (!%p924_p11)
}
  0x37   : > { %s1053_s23 = smov 256   ;;  %s1054_s29 = smov 128  }
  0x38   : > { %s1055_s28 = smov 8   ;;  %p726_p6 = scmp.ge.s32.totalorder %s1050_s22, 1 }
  0x39   : > { %791 = dma.hbm_to_vmem [thread:$0]  (!%p1193_p4), %s1189_s27, 1024, %s1184_s6, %s1197_s15, %s1053_s23, %s1054_s29, %s1055_s28  }
  0x3a   : > { %p171_p9 = scmp.lt.s32.totalorder %s1050_s22, 5 }
  0x3c   : > { %p172_p13 = pnand %p726_p6, %p171_p9 }
  0x3d   : > { %s177_s5 = sand.u32 (!%p172_p13), 1, %s1026_s16  }
  0x3e   : > { %175 = sbr.rel (%p172_p13) target bundleno = 749 (0x2ed), region = 32  ;;  %s727_s11 = sshll.u32 (!%p172_p13), %s177_s5, 6 }
  0x3f   : > { %s178_s30 = scalar_lea.sflag (!%p172_p13), [#allocation5], %s177_s5  ;;  %s1228_s25 = scalar_lea.vmem (!%p172_p13), [#allocation4], %s727_s11 }
  0x45   : > { %1001 = dma.done.wait (%p1156_p7), %s178_s30, 1024  }
  0x46   : > { %1003 = vsyncadd (%p1156_p7), %s178_s30, 4294966272  ;;  %s201_s24 = sand.u32 1, %s1014_s13   ;;  %p728_p12 = scmp.ne.s32.totalorder %s1034_s18, 0 }
  0x47   : > { %s1237_s6 = scalar_lea.vmem [#allocation7], %s201_s24  ;;  %v1056_v0 = vmov (!%p728_p12), 0.0   ;;  %v1057_v1 = vmov (!%p728_p12), -inf  }
  0x48   : > { %206 = sbr.rel (%p728_p12) target bundleno = 80 (0x50), region = 40  ;;  %207 = vst [vmem:[#allocation2] sm:$0xff] (!%p728_p12), %v1056_v0  ;;  %208 = vst [vmem:[#allocation2 + $0x8] sm:$0xff] (!%p728_p12), %v1056_v0 }
  0x49   : > { %209 = vst [vmem:[#allocation2 + $0x10] sm:$0xff] (!%p728_p12), %v1056_v0  ;;  %210 = vst [vmem:[#allocation2 + $0x18] sm:$0xff] (!%p728_p12), %v1056_v0 }
  0x4a   : > { %211 = vst [vmem:[#allocation2 + $0x20] sm:$0xff] (!%p728_p12), %v1056_v0  ;;  %212 = vst [vmem:[#allocation2 + $0x28] sm:$0xff] (!%p728_p12), %v1056_v0 }
  0x4b   : > { %213 = vst [vmem:[#allocation2 + $0x30] sm:$0xff] (!%p728_p12), %v1056_v0  ;;  %214 = vst [vmem:[#allocation2 + $0x38] sm:$0xff] (!%p728_p12), %v1056_v0 }
  0x4c   : > { %215 = vst [vmem:[#allocation3] sm:$0xff] (!%p728_p12), %v1057_v1  ;;  %216 = vst [vmem:[#allocation3 + $0x8] sm:$0xff] (!%p728_p12), %v1057_v1 }
  0x4d   : > { %217 = vst [vmem:[#allocation3 + $0x10] sm:$0xff] (!%p728_p12), %v1057_v1  ;;  %218 = vst [vmem:[#allocation3 + $0x18] sm:$0xff] (!%p728_p12), %v1057_v1 }
  0x4e   : > { %219 = vst [vmem:[#allocation3 + $0x20] sm:$0xff] (!%p728_p12), %v1057_v1  ;;  %220 = vst [vmem:[#allocation3 + $0x28] sm:$0xff] (!%p728_p12), %v1057_v1 }
  0x4f   : > { %221 = vst [vmem:[#allocation3 + $0x30] sm:$0xff] %v1057_v1  ;;  %222 = vst [vmem:[#allocation3 + $0x38] sm:$0xff] %v1057_v1 }
  0x50 PF: > { %v223_v2 = vld [vmem:[#allocation2] sm:$0xff]  ;;  %v224_v4 = vld [vmem:[#allocation2 + $0x8] sm:$0xff]  ;;  %v241_v8 = vld [vmem:[%s1228_s25 + $0x10] sm:$0xff]  ;;  %p729_p7 = scmp.ne.s32.totalorder %s1034_s18, 1 }
  0x51   : > { %v239_v3 = vld [vmem:[%s1228_s25] sm:$0xff]  ;;  %v240_v6 = vld [vmem:[%s1228_s25 + $0x8] sm:$0xff]  ;;  %v225_v7 = vld [vmem:[#allocation2 + $0x10] sm:$0xff]  ;;  %v1058_v61 = vmov (!%p729_p7), 0.0|0.0   ;;  %vm1059_vm0 = vmmov (!%p729_p7), 0   ;;  %vm358_vm1 = vcmask (!%p729_p7), 130112  }
  0x52   : > { %v247_v5 = vadd.f32 %v239_v3, %v223_v2  ;;  %v248_v9 = vadd.f32 %v240_v6, %v224_v4  ;;  %v249_v10 = vadd.f32 %v241_v8, %v225_v7  ;;  %v226_v11 = vld [vmem:[#allocation2 + $0x18] sm:$0xff]  ;;  %v227_v13 = vld [vmem:[#allocation2 + $0x20] sm:$0xff]  ;;  %v228_v16 = vld [vmem:[#allocation2 + $0x28] sm:$0xff]  ;;  %772 = vmatprep.subr.bf16.mxu0 (!%p729_p7), %v1058_v61  ;;  %v1060_v7 = vmov (!%p729_p7), 0.0  }
  0x53   : > { %v242_v12 = vld [vmem:[%s1228_s25 + $0x18] sm:$0xff]  ;;  %v243_v15 = vld [vmem:[%s1228_s25 + $0x20] sm:$0xff]  ;;  %v244_v17 = vld [vmem:[%s1228_s25 + $0x28] sm:$0xff]  ;;  %764 = vmatprep.mubr.msk.f32.mxu0 (!%p729_p7), %vm1059_vm0, %v1060_v7  ;;  %767 = vmatprep.subr.mxu1 (!%p729_p7), %v1060_v7  ;;  %vm365_vm2 = vcmask (!%p729_p7), 195712   ;;  %vm372_vm3 = vcmask (!%p729_p7), 261312   ;;  %vm379_vm4 = vcmask (!%p729_p7), 326912  }
  0x54   : > { %263 = vst [vmem:[#allocation2] sm:$0xff] %v247_v5  ;;  %v250_v14 = vadd.f32 %v242_v12, %v226_v11  ;;  %264 = vst [vmem:[#allocation2 + $0x8] sm:$0xff] %v248_v9  ;;  %v251_v18 = vadd.f32 %v243_v15, %v227_v13  ;;  %v252_v19 = vadd.f32 %v244_v17, %v228_v16  ;;  %v229_v20 = vld [vmem:[#allocation2 + $0x30] sm:$0xff]  ;;  %v230_v22 = vld [vmem:[#allocation2 + $0x38] sm:$0xff]  ;;  %769 = vmatprep.mubr.msk.f32.mxu1 (!%p729_p7), %vm1059_vm0, %v1060_v7  ;;  %vm386_vm5 = vcmask (!%p729_p7), 392512  }
  0x55   : > { %265 = vst [vmem:[#allocation2 + $0x10] sm:$0xff] %v249_v10  ;;  %v245_v21 = vld [vmem:[%s1228_s25 + $0x30] sm:$0xff]  ;;  %v246_v24 = vld [vmem:[%s1228_s25 + $0x38] sm:$0xff]  ;;  %v231_v25 = vld [vmem:[#allocation3] sm:$0xff]  ;;  %v347_v10 = vlaneseq (!%p729_p7)  ;;  %vm393_vm6 = vcmask (!%p729_p7), 458112   ;;  %vm400_vm7 = vcmask (!%p729_p7), 523712  }
  0x56   : > { %266 = vst [vmem:[#allocation2 + $0x18] sm:$0xff] %v250_v14  ;;  %v253_v23 = vadd.f32 %v245_v21, %v229_v20  ;;  %v232_v26 = vld [vmem:[#allocation3 + $0x8] sm:$0xff]  ;;  %267 = vst [vmem:[#allocation2 + $0x20] sm:$0xff] %v251_v18  ;;  %v254_v27 = vadd.f32 %v246_v24, %v230_v22  ;;  %v255_v28 = vmax.f32 %v231_v25, %v239_v3  ;;  %v233_v30 = vld [vmem:[#allocation3 + $0x10] sm:$0xff]  ;;  %282 = sbr.rel (%p729_p7) target bundleno = 724 (0x2d4), region = 44  ;;  %vm451_vm8 = vcmask (!%p729_p7), 1040384  }
  0x57   : > { %268 = vst [vmem:[#allocation2 + $0x28] sm:$0xff] %v252_v19  ;;  %v256_v29 = vmax.f32 %v232_v26, %v240_v6  ;;  %v234_v31 = vld [vmem:[#allocation3 + $0x18] sm:$0xff]  ;;  %v235_v32 = vld [vmem:[#allocation3 + $0x20] sm:$0xff]  ;;  %v257_v33 = vmax.f32 %v233_v30, %v241_v8  ;;  %v236_v36 = vld [vmem:[#allocation3 + $0x28] sm:$0xff]  ;;  %v348_v13 = vand.u32 (!%p729_p7), 127, %v347_v10  ;;  %vm462_vm9 = vcmask (!%p729_p7), 523264  }
  0x58   : > { %269 = vst [vmem:[#allocation2 + $0x30] sm:$0xff] %v253_v23  ;;  %v258_v34 = vmax.f32 %v234_v31, %v242_v12  ;;  %v259_v35 = vmax.f32 %v235_v32, %v243_v15  ;;  %v237_v37 = vld [vmem:[#allocation3 + $0x30] sm:$0xff]  ;;  %v238_v38 = vld [vmem:[#allocation3 + $0x38] sm:$0xff]  ;;  %270 = vst [vmem:[#allocation2 + $0x38] sm:$0xff] %v254_v27  ;;  %v260_v39 = vmax.f32 %v236_v36, %v244_v17  ;;  %v350_v17 = vshrl.u32 (!%p729_p7), %v347_v10, 7 }
  0x59   : > { %271 = vst [vmem:[#allocation3] sm:$0xff] %v255_v28  ;;  %272 = vst [vmem:[#allocation3 + $0x8] sm:$0xff] %v256_v29  ;;  %v261_v40 = vmax.f32 %v237_v37, %v245_v21  ;;  %v262_v41 = vmax.f32 %v238_v38, %v246_v24  ;;  %v453_v58 = vld [vmem:[%s1349_s1] sm:$0xff] (!%p729_p7)  ;;  %v454_v59 = vld [vmem:[%s1349_s1 + $0x8] sm:$0xff] (!%p729_p7)  ;;  %v353_v16 = vadd.s32 (!%p729_p7), 4294967288, %v348_v13  ;;  %v360_v22 = vadd.s32 (!%p729_p7), 4294967280, %v348_v13 }
  0x5a   : > { %273 = vst [vmem:[#allocation3 + $0x10] sm:$0xff] %v257_v33  ;;  %274 = vst [vmem:[#allocation3 + $0x18] sm:$0xff] %v258_v34  ;;  %v773_v60 = vpack.c.bf16 (!%p729_p7), %v454_v59, %v453_v58  ;;  %v455_v62 = vld [vmem:[%s1349_s1 + $0x10] sm:$0xff] (!%p729_p7)  ;;  %v456_v63 = vld [vmem:[%s1349_s1 + $0x18] sm:$0xff] (!%p729_p7)  ;;  %v351_v23 = vsub.s32 (!%p729_p7), %v348_v13, %v350_v17  ;;  %v367_v25 = vadd.s32 (!%p729_p7), 4294967272, %v348_v13  ;;  %v374_v28 = vadd.s32 (!%p729_p7), 4294967264, %v348_v13 }
  0x5b   : > { %275 = vst [vmem:[#allocation3 + $0x20] sm:$0xff] %v259_v35  ;;  %276 = vst [vmem:[#allocation3 + $0x28] sm:$0xff] %v260_v39  ;;  %v283_v43 = vld [vmem:[#allocation2] sm:$0xff] (!%p729_p7)  ;;  %v284_v45 = vld [vmem:[#allocation2 + $0x8] sm:$0xff] (!%p729_p7)  ;;  %v776_v0 = vpack.c.bf16 (!%p729_p7), %v456_v63, %v455_v62  ;;  %v356_v20 = vsub.s32 (!%p729_p7), %v353_v16, %v350_v17  ;;  %v381_v29 = vadd.s32 (!%p729_p7), 4294967256, %v348_v13  ;;  %v363_v31 = vsub.s32 (!%p729_p7), %v360_v22, %v350_v17 }
  0x5c   : > { %277 = vst [vmem:[#allocation3 + $0x30] sm:$0xff] %v261_v40  ;;  %278 = vst [vmem:[#allocation3 + $0x38] sm:$0xff] %v262_v41  ;;  %v285_v42 = vld [vmem:[#allocation2 + $0x10] sm:$0xff] (!%p729_p7)  ;;  %291 = vadd.xlane.f32.xlu0 (!%p729_p7), %v283_v43  ;;  %774 = vmatpush3.bf16.msra.mxu0 (!%p729_p7), %v773_v60  ;;  %v457_v1 = vld [vmem:[%s1349_s1 + $0x20] sm:$0xff] (!%p729_p7)  ;;  %v388_v33 = vadd.s32 (!%p729_p7), 4294967248, %v348_v13  ;;  %v370_v35 = vsub.s32 (!%p729_p7), %v367_v25, %v350_v17  ;;  %v395_v39 = vadd.s32 (!%p729_p7), 4294967240, %v348_v13 }
  0x5d   : > { %295 = vadd.xlane.f32.xlu1 %v285_v42  ;;  %v286_v44 = vld [vmem:[#allocation2 + $0x18] sm:$0xff]  ;;  %v287_v49 = vld [vmem:[#allocation2 + $0x20] sm:$0xff]  ;;  %775 = vmatprep.subr.bf16.mxu0 %v1058_v61  ;;  %v458_v2 = vld [vmem:[%s1349_s1 + $0x28] sm:$0xff]  ;;  %v377_v40 = vsub.s32 %v374_v28, %v350_v17  ;;  %v384_v42 = vsub.s32 %v381_v29, %v350_v17  ;;  %vm541_vm10 = vcmask 1043456   ;;  %vm537_vm11 = vcmask 31744  }
  0x5e   : > { %v288_v51 = vld [vmem:[#allocation2 + $0x28] sm:$0xff]  ;;  %v779_v3 = vpack.c.bf16 %v458_v2, %v457_v1  ;;  %v459_v4 = vld [vmem:[%s1349_s1 + $0x30] sm:$0xff]  ;;  %v460_v5 = vld [vmem:[%s1349_s1 + $0x38] sm:$0xff]  ;;  %vm625_vm12 = vcmask 516096  }
  0x5f   : > { %v289_v53 = vld [vmem:[#allocation2 + $0x30] sm:$0xff]  ;;  %v290_v55 = vld [vmem:[#allocation2 + $0x38] sm:$0xff]  ;;  %v782_v6 = vpack.c.bf16 %v460_v5, %v459_v4 }
  0x60   : > { %293 = vadd.xlane.f32.xlu0 %v284_v45  ;;  %v308_v46 = vld [vmem:[#allocation3 + $0x8] sm:$0xff]  ;;  %v307_v47 = vld [vmem:[#allocation3] sm:$0xff]  ;;  %777 = vmatpush3.bf16.msra.mxu0 %v776_v0 }
  0x61   : > { %297 = vadd.xlane.f32.xlu1 %v286_v44  ;;  %v309_v48 = vld [vmem:[#allocation3 + $0x10] sm:$0xff]  ;;  %v310_v50 = vld [vmem:[#allocation3 + $0x18] sm:$0xff]  ;;  %778 = vmatprep.subr.bf16.mxu0 %v1058_v61 }
  0x62   : > { %v311_v52 = vld [vmem:[#allocation3 + $0x20] sm:$0xff]  ;;  %v312_v54 = vld [vmem:[#allocation3 + $0x28] sm:$0xff] }
  0x63   : > { %v313_v56 = vld [vmem:[#allocation3 + $0x30] sm:$0xff]  ;;  %v314_v57 = vld [vmem:[#allocation3 + $0x38] sm:$0xff] }
  0x64   : > { %315 = vmax.xlane.f32.xlu0 %v307_v47  ;;  %780 = vmatpush3.bf16.msra.mxu0 %v779_v3 }
  0x65   : > { %317 = vmax.xlane.f32.xlu1 %v308_v46  ;;  %781 = vmatprep.subr.bf16.mxu0 %v1058_v61 }
  0x68   : > { %299 = vadd.xlane.f32.xlu0 %v287_v49  ;;  %783 = vmatpush3.bf16.msra.mxu0 %v782_v6  ;;  %v391_v49 = vsub.s32 %v388_v33, %v350_v17 }
  0x69   : > { %319 = vmax.xlane.f32.xlu1 %v309_v48 }
  0x6c   : > { %301 = vadd.xlane.f32.xlu0 %v288_v51 }
  0x6d   : > { %321 = vmax.xlane.f32.xlu1 %v310_v50 }
  0x70   : > { %303 = vadd.xlane.f32.xlu0 %v289_v53 }
  0x71   : > { %323 = vmax.xlane.f32.xlu1 %v311_v52 }
  0x74   : > { %305 = vadd.xlane.f32.xlu0 %v290_v55 }
  0x75   : > { %325 = vmax.xlane.f32.xlu1 %v312_v54  ;;  %v398_v54 = vsub.s32 %v395_v39, %v350_v17  ;;  %v461_v17 = vld [vmem:[%s1350_s2] sm:$0xf] }
  0x76   : > { %768 = vmatpush3.msk.msra.mxu1 %vm541_vm10, %v461_v17 }
  0x78   : > { %327 = vmax.xlane.f32.xlu0 %v313_v56 }
  0x79   : > { %329 = vmax.xlane.f32.xlu1 %v314_v57 }
  0xe9   : > { %v292_v9 = vpop.xlane.xlu0 %291 }
  0xea   : > { %v296_v8 = vpop.xlane.xlu1 %295  ;;  %v331_v24 = vmul.f32 0.00390625, %v292_v9 }
  0xeb   : > { %v333_v32 = vmul.f32 0.00390625, %v296_v8 }
  0xec   : > { %v352_v34 = vrot.slane %v331_v24, %v351_v23 }
  0xed   : > { %v294_v12 = vpop.xlane.xlu0 %293  ;;  %v364_v47 = vrot.slane %v333_v32, %v363_v31 }
  0xee   : > { %v298_v11 = vpop.xlane.xlu1 %297  ;;  %v332_v21 = vmul.f32 0.00390625, %v294_v12 }
  0xef   : > { %v334_v36 = vmul.f32 0.00390625, %v298_v11 }
  0xf0   : > { %v357_v30 = vrot.slane %v332_v21, %v356_v20 }
  0xf1   : > { %v316_v15 = vpop.xlane.xlu0 %315  ;;  %v371_v51 = vrot.slane %v334_v36, %v370_v35 }
  0xf2   : > { %v318_v14 = vpop.xlane.xlu1 %317  ;;  %v359_v43 = vsel %vm358_vm1, %v357_v30, %v352_v34  ;;  %v414_v45 = vrot.slane %v316_v15, %v351_v23 }
  0xf3   : > { %v418_v44 = vrot.slane %v318_v14, %v356_v20  ;;  %v366_v56 = vsel %vm365_vm2, %v364_v47, %v359_v43 }
  0xf4   : > { %v373_v1 = vsel %vm372_vm3, %v371_v51, %v366_v56 }
  0xf5   : > { %v300_v19 = vpop.xlane.xlu0 %299  ;;  %v419_v60 = vsel %vm358_vm1, %v418_v44, %v414_v45 }
  0xf6   : > { %v320_v18 = vpop.xlane.xlu1 %319  ;;  %v335_v41 = vmul.f32 0.00390625, %v300_v19 }
  0xf7   : > { %v423_v48 = vrot.slane %v320_v18, %v363_v31 }
  0xf8   : > { %v378_v57 = vrot.slane %v335_v41, %v377_v40 }
  0xf9   : > { %v302_v27 = vpop.xlane.xlu0 %301  ;;  %v424_v63 = vsel %vm365_vm2, %v423_v48, %v419_v60 }
  0xfa   : > { %v322_v26 = vpop.xlane.xlu1 %321  ;;  %v336_v46 = vmul.f32 0.00390625, %v302_v27  ;;  %v380_v6 = vsel %vm379_vm4, %v378_v57, %v373_v1 }
  0xfb   : > { %v428_v52 = vrot.slane %v322_v26, %v370_v35 }
  0xfc   : > { %v385_v61 = vrot.slane %v336_v46, %v384_v42 }
  0xfd   : > { %v304_v38 = vpop.xlane.xlu0 %303  ;;  %v429_v2 = vsel %vm372_vm3, %v428_v52, %v424_v63 }
  0xfe   : > { %v324_v37 = vpop.xlane.xlu1 %323  ;;  %v337_v50 = vmul.f32 0.00390625, %v304_v38  ;;  %v387_v10 = vsel %vm386_vm5, %v385_v61, %v380_v6 }
  0xff   : > { %v433_v58 = vrot.slane %v324_v37, %v377_v40 }
 0x100   : > { %v392_v0 = vrot.slane %v337_v50, %v391_v49 }
 0x101   : > { %v306_v55 = vpop.xlane.xlu0 %305  ;;  %v434_v7 = vsel %vm379_vm4, %v433_v58, %v429_v2 }
 0x102   : > { %v326_v53 = vpop.xlane.xlu1 %325  ;;  %v338_v59 = vmul.f32 0.00390625, %v306_v55  ;;  %v394_v12 = vsel %vm393_vm6, %v392_v0, %v387_v10 }
 0x103   : > { %v438_v62 = vrot.slane %v326_v53, %v384_v42 }
 0x104   : > { %v399_v3 = vrot.slane %v338_v59, %v398_v54 }
 0x105   : > { %v328_v4 = vpop.xlane.xlu0 %327  ;;  %v439_v11 = vsel %vm386_vm5, %v438_v62, %v434_v7 }
 0x106   : > { %v330_v5 = vpop.xlane.xlu1 %329  ;;  %v443_v8 = vrot.slane %v328_v4, %v391_v49  ;;  %v401_v15 = vsel %vm400_vm7, %v399_v3, %v394_v12 }
 0x107   : > { %v448_v9 = vrot.slane %v330_v5, %v398_v54 }
 0x108   : > { %v444_v13 = vsel %vm393_vm6, %v443_v8, %v439_v11 }
 0x109   : > { %v449_v14 = vsel %vm400_vm7, %v448_v9, %v444_v13 }
 0x10a   : > { %v452_v16 = vsel %vm451_vm8, %v401_v15, %v449_v14 }
 0x10b   : > { %765 = vmatmul.mubr.msk.f32.vlgmr.msra.gmra.mrb[0].mxu0 %vm462_vm9, %v452_v16 }
 0x1de   : > { %v532_v18 = vpop.f32.mrb[0].mxu0 }
 0x1df   : > { %v536_v19 = vmax.f32 %v532_v18, 0.0  ;;  %v766_v20 = vpop.f32.mrb[1].mxu0 }
 0x1e1   : > { %770 = vmatmul.mubr.msk.f32.vlgmr.msra.gmra.mrb[0].mxu1 %vm537_vm11, %v536_v19 }
 0x2b4   : > { %v611_v21 = vpop.f32.mrb[0].mxu1 }
 0x2b5   : > { %v616_v22 = vrot.slane %v611_v21, 1  ;;  %v771_v23 = vpop.f32.mrb[1].mxu1 }
 0x2b7   : > { %v618_v24 = vadd.f32 %v616_v22, %v611_v21 }
 0x2b9   : > { %v733_v25 = vmul.f32 -1.442695, %v618_v24 }
 0x2bb   : > { %894 = vpow2.f32 %v733_v25 }
 0x2c5   : > { %v895_v26 = vpop.eup %894 }
 0x2c6   : > { %v622_v27 = vadd.f32 1.0, %v895_v26 }
 0x2c8   : > { %896 = vrcp.f32 %v622_v27 }
 0x2d2   : > { %v897_v28 = vpop.eup %896 }
 0x2d3   : > { %626 = vst.msk [vmem:[%s1237_s6] sm:$0x1] %vm625_vm12, %v897_v28 }
 0x2d4 PF: > { %s734_s29 = sshll.u32 %s1038_s19, 4  ;;  %s640_s30 = sshll.u32 %s1237_s6, 4  ;;  %s641_s30 = int_to_ptr.vmem [resolvable:$true] %s640_s30 }
 0x2d5   : > { %s1289_s11 = scalar_lea.hbm %s1351_s3, %s734_s29  ;;  %s628_s25 = scalar_lea.sflag [#allocation6], %s201_s24 }
 0x2d6   : > { %s928_s18 = scalar_lea.vmem %s641_s30, 16  ;;  %p1362_p4 = scmp.ne.s32.totalorder %s1359_s7, 0 }
 0x2d7   : > { %p929_p2 = scmp.ne.s32.totalorder %s641_s30, %s928_s18  ;;  %s1061_s4 = smov [#allocation7]  }
 0x2d8   : > { %s932_s27 = sshll.u32 %s1061_s4, 4  ;;  %s933_s27 = int_to_ptr.vmem [resolvable:$false] %s932_s27 }
 0x2d9   : > { %p930_p0 = pnand %p929_p2, %p1362_p4  ;;  %s934_s15 = scalar_lea.vmem %s933_s27, 32 }
 0x2da   : > { %p935_p5 = scmp.lt.s32.totalorder %s641_s30, %s933_s27  ;;  %p936_p8 = scmp.lt.s32.totalorder %s934_s15, %s928_s18 }
 0x2db   : > { %p931_p1 = pneg %p930_p0 }
 0x2dc   : > { %p937_p3 = por %p936_p8, %p935_p5 }
 0x2de   : > { %p938_p10 = pnand %p937_p3, %p931_p1 }
 0x2e0   : > { %941 = shalt.err (!%p938_p10)
}
 0x2e1   : > { %s942_s19 = scalar_lea.hbm %s1289_s11, 16  ;;  %s946_s26 = scalar_lea.hbm %s1351_s3, 32 }
 0x2e2   : > { %p943_p11 = scmp.ne.s32.totalorder %s1289_s11, %s942_s19  ;;  %p947_p13 = scmp.lt.u32.totalorder %s1289_s11, %s1351_s3 }
 0x2e3   : > { %p948_p12 = scmp.lt.u32.totalorder %s946_s26, %s942_s19  ;;  %p950_p2 = scmp.lt.u32.totalorder %s942_s19, %s1289_s11 }
 0x2e4   : > { %p944_p6 = pnand %p943_p11, %p1362_p4 }
 0x2e5   : > { %p949_p7 = por %p948_p12, %p947_p13 }
 0x2e6   : > { %p945_p9 = pneg %p944_p6 }
 0x2e7   : > { %p951_p0 = por %p950_p2, %p949_p7 }
 0x2e9   : > { %p952_p1 = pnand %p951_p0, %p945_p9 }
 0x2eb   : > { %955 = shalt.err (!%p952_p1)
}
 0x2ec   : > { %786 = dma.vmem_to_hbm [thread:$0]  (%p1362_p4), %s641_s30, 16, %s1289_s11, %s628_s25  }
 0x2ed PF: > { %p797_p5 = scmp.ge.s32.totalorder %s1050_s22, 2  ;;  %s652_s28 = sand.u32 1, %s1010_s12  }
 0x2ee   : > { %p1363_p8 = scmp.ne.s32.totalorder %s1360_s10, 0  ;;  %s653_s5 = scalar_lea.sflag [#allocation6], %s652_s28 }
 0x2f0   : > { %p793_p3 = pnand %p797_p5, %p1363_p8 }
 0x2f2   : > { %1005 = dma.done.wait (!%p793_p3), %s653_s5, 16  }
 0x2f3   : > { %1007 = vsyncadd (!%p793_p3), %s653_s5, 4294967280  ;;  %s19_s22 = sadd.s32 1, %s1050_s22   ;;  %s1364_s7 = sld [smem:[#allocation10_spill]] }
 0x2f4   : > { %p16_p10 = scmp.ge.s32.totalorder %s19_s22, 6   ;;  %s1365_s11 = sld [smem:[#allocation11_spill]] }
 0x2f5   : > { %s1366_s12 = smov %s1014_s13  ;;  %s1367_s13 = smov %s1018_s14 }
 0x2f6   : > { %s1368_s14 = smov %s1169_s8  ;;  %s1369_s15 = smov %s1026_s16 }
 0x2f7   : > { %s1370_s16 = smov %s1030_s17  ;;  %s1371_s17 = smov %s1172_s9 }
 0x2f8   : > { %s1372_s18 = smov %s1042_s20  ;;  %s1373_s19 = smov %s1046_s21 }
 0x2f9   : > { %s1374_s20 = smov %s1364_s7  ;;  %18 = sbr.rel (!%p16_p10) target bundleno = 9 (0x9), region = 85 }
 0x2fa   : > { %s1375_s21 = smov %s1365_s11 }
 0x300   :  { %657 = vsyncpa [#allocation5], 1 }
 0x301   :  { %659 = vsyncpa [#allocation5 + $0x1], 1 }
 0x302   :  { %660 = vsyncpa [#allocation6], 1 }
 0x303   :  { %662 = vsyncpa [#allocation6 + $0x1], 1 }

</bundles_post_ra>
